<compile_context>
chip_gen: v6e
topology: v6e:2x2x1
jax: 0.10.0
libtpu: 0.0.40
codegen_flags: <defaults>
</compile_context>

<pallas_src>
import jax
import jax.numpy as jnp
from jax.experimental import pallas as pl
from jax.experimental.pallas import tpu as pltpu

# ---- problem sizes (small, consistent with CombOptNet-style encoders) ----
B = 2      # batch
D = 32     # input feature dim
H = 64     # encoder hidden dim (per encoder; packed -> 2H = 128 lanes)
N = 8      # number of ILP variables (cost dim)
M_L = 4    # learned constraints (encoder)
M_K = 4    # known constraints (known_ab_encoder)
M = M_L + M_K

ENC_OUT = M_L * N + M_L + N   # a_l flat + b_l + c = 44
KNW_OUT = M_K * N + M_K       # a_k flat + b_k     = 36
H2 = 2 * H                    # 128 packed hidden width
OUT_PAD = 128                 # lane-dense output width
ROWS = 8                      # sublane-padded batch (full f32 tile)

# Output-column layout of the permuted second layer (final order already):
A_L_OFF = 0                   # 32 cols
A_K_OFF = M_L * N             # 32 cols  -> a = flat[:, 0:64].reshape(B, M, N)
B_L_OFF = A_K_OFF + M_K * N   # 4 cols
B_K_OFF = B_L_OFF + M_L       # 4 cols   -> b = flat[:, 64:72]
C_OFF = B_K_OFF + M_K         # 8 cols   -> c = flat[:, 72:80]

# Row layout of the fused weight slab wb (176, 128):
W1_ROW = 0
W2_ROW = D                    # 32
B1_ROW = D + H2               # 160
B2_ROW = B1_ROW + ROWS        # 168
WB_ROWS = B2_ROW + ROWS       # 176


def _fused_encoder_kernel(x_ref, wb_ref, out_ref):
    """relu(x @ W1cat + b1) @ W2blk + b2 -> one full (8, 128) f32 tile."""
    x = x_ref[...]                                   # (ROWS, D)
    w1 = wb_ref[W1_ROW:W1_ROW + D, :]                # (D, 128)   aligned slice
    w2 = wb_ref[W2_ROW:W2_ROW + H2, :]               # (128, 128) aligned slice
    b1 = wb_ref[B1_ROW:B1_ROW + ROWS, :]             # (8, 128)   pre-broadcast
    b2 = wb_ref[B2_ROW:B2_ROW + ROWS, :]             # (8, 128)   pre-broadcast
    h = jnp.maximum(
        jnp.dot(x, w1, preferred_element_type=jnp.float32) + b1, 0.0)
    out_ref[...] = jnp.dot(h, w2, preferred_element_type=jnp.float32) + b2


def pack_params(params):
    """Fuse both encoders into one (176, 128) slab. Run ONCE at init time."""
    (w1e, b1e, w2e, b2e, w1k, b1k, w2k, b2k) = params
    # First layer: concatenate on the lane dim.
    w1cat = jnp.concatenate([w1e, w1k], axis=1)                     # (D, 128)
    b1row = jnp.concatenate([b1e, b1k], axis=1)                     # (1, 128)
    # Second layer: block-diagonal AND column-permuted to final output order.
    w2blk = jnp.zeros((H2, OUT_PAD), jnp.float32)
    b2row = jnp.zeros((1, OUT_PAD), jnp.float32)
    # encoder head (hidden rows 0:H):  a_l | b_l | c
    w2blk = w2blk.at[:H, A_L_OFF:A_L_OFF + M_L * N].set(w2e[:, :M_L * N])
    w2blk = w2blk.at[:H, B_L_OFF:B_L_OFF + M_L].set(w2e[:, M_L * N:M_L * N + M_L])
    w2blk = w2blk.at[:H, C_OFF:C_OFF + N].set(w2e[:, M_L * N + M_L:])
    b2row = b2row.at[:, A_L_OFF:A_L_OFF + M_L * N].set(b2e[:, :M_L * N])
    b2row = b2row.at[:, B_L_OFF:B_L_OFF + M_L].set(b2e[:, M_L * N:M_L * N + M_L])
    b2row = b2row.at[:, C_OFF:C_OFF + N].set(b2e[:, M_L * N + M_L:])
    # known head (hidden rows H:2H):  a_k | b_k
    w2blk = w2blk.at[H:, A_K_OFF:A_K_OFF + M_K * N].set(w2k[:, :M_K * N])
    w2blk = w2blk.at[H:, B_K_OFF:B_K_OFF + M_K].set(w2k[:, M_K * N:])
    b2row = b2row.at[:, A_K_OFF:A_K_OFF + M_K * N].set(b2k[:, :M_K * N])
    b2row = b2row.at[:, B_K_OFF:B_K_OFF + M_K].set(b2k[:, M_K * N:])
    wb = jnp.concatenate([
        w1cat,
        w2blk,
        jnp.broadcast_to(b1row, (ROWS, OUT_PAD)),
        jnp.broadcast_to(b2row, (ROWS, OUT_PAD)),
    ], axis=0)                                                      # (176, 128)
    assert wb.shape == (WB_ROWS, OUT_PAD)
    return wb


@jax.jit
def my_solver_core_eval(x, wb_packed):
    """Eval-mode MySolverCore.forward: returns (A, b, c)."""
    bsz = x.shape[0]
    # Pad batch to a full 8-sublane f32 tile (unmasked full-tile store).
    x_pad = jnp.zeros((ROWS, D), x.dtype).at[:bsz, :].set(x)

    vmem = pl.BlockSpec(memory_space=pltpu.MemorySpace.VMEM)
    flat = pl.pallas_call(
        _fused_encoder_kernel,
        out_shape=jax.ShapeDtypeStruct((ROWS, OUT_PAD), jnp.float32),
        in_specs=[vmem, vmem],
        out_specs=vmem,
        cost_estimate=pl.CostEstimate(
            flops=2 * (ROWS * D * H2 + ROWS * H2 * OUT_PAD),   # ~328 KFLOP
            transcendentals=0,
            bytes_accessed=4 * (ROWS * D + WB_ROWS * OUT_PAD + ROWS * OUT_PAD),
        ),
    )(x_pad, wb_packed)

    # Columns are already in final order -> pure static slices + one reshape.
    a = flat[:bsz, A_L_OFF:A_K_OFF + M_K * N].reshape(bsz, M, N)  # cat dim=-2
    b = flat[:bsz, B_L_OFF:B_K_OFF + M_K]                          # cat dim=-1
    c = flat[:bsz, C_OFF:C_OFF + N]
    return a, b, c


def _init_params(key):
    """Deterministic synthetic weights (He-ish scaling)."""
    ks = jax.random.split(key, 8)
    s1 = (2.0 / D) ** 0.5
    s2 = (2.0 / H) ** 0.5
    w1e = jax.random.normal(ks[0], (D, H), jnp.float32) * s1
    b1e = jax.random.normal(ks[1], (1, H), jnp.float32) * 0.01
    w2e = jax.random.normal(ks[2], (H, ENC_OUT), jnp.float32) * s2
    b2e = jax.random.normal(ks[3], (1, ENC_OUT), jnp.float32) * 0.01
    w1k = jax.random.normal(ks[4], (D, H), jnp.float32) * s1
    b1k = jax.random.normal(ks[5], (1, H), jnp.float32) * 0.01
    w2k = jax.random.normal(ks[6], (H, KNW_OUT), jnp.float32) * s2
    b2k = jax.random.normal(ks[7], (1, KNW_OUT), jnp.float32) * 0.01
    return (w1e, b1e, w2e, b2e, w1k, b1k, w2k, b2k)


def _reference(x, params):
    """Plain-JAX reference of the same eval-mode forward."""
    (w1e, b1e, w2e, b2e, w1k, b1k, w2k, b2k) = params
    out_e = jnp.maximum(x @ w1e + b1e, 0.0) @ w2e + b2e
    out_k = jnp.maximum(x @ w1k + b1k, 0.0) @ w2k + b2k
    a_l = out_e[:, :M_L * N].reshape(B, M_L, N)
    b_l = out_e[:, M_L * N:M_L * N + M_L]
    c = out_e[:, M_L * N + M_L:]
    a_k = out_k[:, :M_K * N].reshape(B, M_K, N)
    b_k = out_k[:, M_K * N:]
    return (jnp.concatenate([a_l, a_k], axis=-2),
            jnp.concatenate([b_l, b_k], axis=-1),
            c)


if __name__ == "__main__":
    key = jax.random.PRNGKey(0)
    kx, kp = jax.random.split(key)
    x = jax.random.normal(kx, (B, D), jnp.float32)
    params = _init_params(kp)

    # Pack once at init time (outside the per-call jit).
    wb_packed = jax.block_until_ready(pack_params(params))

    a_out, b_out, c_out = my_solver_core_eval(x, wb_packed)
    jax.block_until_ready((a_out, b_out, c_out))

    a_ref, b_ref, c_ref = _reference(x, params)
    assert a_out.shape == (B, M, N) and b_out.shape == (B, M) and c_out.shape == (B, N)
    assert jnp.allclose(a_out, a_ref, atol=1e-4, rtol=1e-4)
    assert jnp.allclose(b_out, b_ref, atol=1e-4, rtol=1e-4)
    assert jnp.allclose(c_out, c_ref, atol=1e-4, rtol=1e-4)

    print("KERNEL_OK")
</pallas_src>

<mosaic_0001>
module attributes {stable_mosaic.version = 11 : i64} {
  func.func @_fused_encoder_kernel(%arg0: memref<8x32xf32, #tpu.memory_space<vmem>>, %arg1: memref<176x128xf32, #tpu.memory_space<vmem>>, %arg2: memref<8x128xf32, #tpu.memory_space<vmem>>) attributes {dimension_semantics = [], scalar_prefetch = 0 : i64, scratch_operands = 0 : i64, tpu.core_type = #tpu.core_type<tc>} {
    %c0 = arith.constant 0 : index
    %c0_0 = arith.constant 0 : index
    %0 = vector.load %arg0[%c0, %c0_0] : memref<8x32xf32, #tpu.memory_space<vmem>>, vector<8x32xf32>
    %c0_1 = arith.constant 0 : index
    %c0_2 = arith.constant 0 : index
    %1 = vector.load %arg1[%c0_1, %c0_2] : memref<176x128xf32, #tpu.memory_space<vmem>>, vector<32x128xf32>
    %c32 = arith.constant 32 : index
    %c0_3 = arith.constant 0 : index
    %2 = vector.load %arg1[%c32, %c0_3] : memref<176x128xf32, #tpu.memory_space<vmem>>, vector<128x128xf32>
    %c160 = arith.constant 160 : index
    %c0_4 = arith.constant 0 : index
    %3 = vector.load %arg1[%c160, %c0_4] : memref<176x128xf32, #tpu.memory_space<vmem>>, vector<8x128xf32>
    %c168 = arith.constant 168 : index
    %c0_5 = arith.constant 0 : index
    %4 = vector.load %arg1[%c168, %c0_5] : memref<176x128xf32, #tpu.memory_space<vmem>>, vector<8x128xf32>
    %cst = arith.constant dense<0.000000e+00> : vector<8x128xf32>
    %5 = tpu.matmul %0, %1, %cst {dimension_numbers = #tpu.dot_dimension_numbers<[1], [0], [0], [1], [0, 0, 1, 1], [], []>} : vector<8x32xf32>, vector<32x128xf32>, vector<8x128xf32> -> vector<8x128xf32>
    %6 = arith.addf %5, %3 : vector<8x128xf32>
    %cst_6 = arith.constant 0.000000e+00 : f32
    %7 = vector.broadcast %cst_6 : f32 to vector<8x128xf32>
    %8 = arith.maximumf %6, %7 : vector<8x128xf32>
    %cst_7 = arith.constant dense<0.000000e+00> : vector<8x128xf32>
    %9 = tpu.matmul %8, %2, %cst_7 {dimension_numbers = #tpu.dot_dimension_numbers<[1], [0], [0], [1], [0, 0, 1, 1], [], []>} : vector<8x128xf32>, vector<128x128xf32>, vector<8x128xf32> -> vector<8x128xf32>
    %10 = arith.addf %9, %4 : vector<8x128xf32>
    %c0_8 = arith.constant 0 : index
    %c0_9 = arith.constant 0 : index
    %11 = vector.load %arg2[%c0_8, %c0_9] : memref<8x128xf32, #tpu.memory_space<vmem>>, vector<8x128xf32>
    tpu.vector_store %arg2[%c0_8, %c0_9], %10 {strides = array<i32>} : memref<8x128xf32, #tpu.memory_space<vmem>>, vector<8x128xf32>,
    return
  }
}

</mosaic_0001>

<bundles_post_ra>
// kernel: my_solver_core_eval.1
= control target key start
LH: loop header
LB: loop body
LE: loop exit
PB: predicated region body
PF: predicated region fallthrough
CT: control target
= control target key end

     0   :  { %7 = vsyncpa [#allocation3], 0  ;;  %s295_s9 = smov [#allocation2]   ;;  %s346_s0 = inlined_call_operand.vmem [shape: f32[8,32], index: 0, kind: input, shape index: {}]   ;;  %s347_s1 = inlined_call_operand.hbm [shape: f32[176,128], index: 1, kind: input, shape index: {}]   ;;  %s348_s2 = inlined_call_operand.vmem [shape: f32[8,128], index: 2, kind: output, shape index: {}]  }
   0x1   :  { %s15_s10 = sshll.u32 %s295_s9, 4  ;;  %s16_s10 = int_to_ptr.vmem [resolvable:$true] %s15_s10 }
   0x2   :  { %s281_s11 = scalar_lea.vmem %s16_s10, 2816  ;;  %p286_p1 = scmp.lt.s32.totalorder %s16_s10, %s16_s10 }
   0x3   :  { %p282_p0 = scmp.ne.s32.totalorder %s16_s10, %s281_s11  ;;  %p287_p2 = scmp.lt.s32.totalorder %s281_s11, %s281_s11 }
   0x5   :  { %p288_p3 = por %p287_p2, %p286_p1 }
   0x7   :  { %p289_p4 = pnand %p288_p3, %p282_p0 }
   0x9   :  { %292 = shalt.err (!%p289_p4)
}
   0xa   :  { %s296_s12 = smov 128   ;;  %s297_s13 = smov 8  }
   0xb   :  { %21 = dma.hbm_to_vmem [thread:$0]  %s347_s1, 2816, %s16_s10, [#allocation3], %s296_s12, %s296_s12, %s297_s13  }
   0xc   :  { %293 = dma.done.wait [#allocation3], 2816  }
   0xd   :  { %294 = vsyncadd [#allocation3], 4294964480  ;;  %v298_v0 = vmov 0.0   ;;  %vm299_vm0 = vmmov 0   ;;  %v29_v1 = vld [vmem:[#allocation2 + $0x18] sm:$0xff]  ;;  %v28_v2 = vld [vmem:[#allocation2 + $0x10] sm:$0xff] }
   0xe   :  { %222 = vmatprep.subr.mxu0 %v298_v0  ;;  %230 = vmatprep.mubr.msk.f32.mxu0 %vm299_vm0, %v298_v0  ;;  %v45_v3 = vld [vmem:[#allocation2 + $0x98] sm:$0xff]  ;;  %v27_v4 = vld [vmem:[#allocation2 + $0x8] sm:$0xff]  ;;  %v44_v5 = vld [vmem:[#allocation2 + $0x90] sm:$0xff]  ;;  %vm48_vm1 = vcmask 261120  }
   0xf   :  { %233 = vmatprep.subr.mxu1 %v298_v0  ;;  %265 = vmatprep.mubr.msk.f32.mxu1 %vm299_vm0, %v298_v0  ;;  %v43_v6 = vld [vmem:[#allocation2 + $0x88] sm:$0xff]  ;;  %v26_v7 = vld [vmem:[#allocation2] sm:$0xff]  ;;  %v41_v10 = vld [vmem:[#allocation2 + $0x78] sm:$0xff] }
  0x10   :  { %223 = vmatpush3.msra.mxu0 %v29_v1  ;;  %234 = vmatpush3.msra.mxu1 %v45_v3  ;;  %v25_v8 = vld [vmem:[%s346_s0] sm:$0xff]  ;;  %v40_v11 = vld [vmem:[#allocation2 + $0x70] sm:$0xff]  ;;  %v39_v12 = vld [vmem:[#allocation2 + $0x68] sm:$0xff] }
  0x11   :  { %224 = vmatprep.subr.mxu0 %v298_v0  ;;  %235 = vmatprep.subr.mxu1 %v298_v0  ;;  %v42_v9 = vld [vmem:[#allocation2 + $0x80] sm:$0xff]  ;;  %v37_v14 = vld [vmem:[#allocation2 + $0x58] sm:$0xff]  ;;  %v36_v15 = vld [vmem:[#allocation2 + $0x50] sm:$0xff] }
  0x12   :  { %225 = vmatpush3.msra.mxu0 %v28_v2  ;;  %236 = vmatpush3.msra.mxu1 %v44_v5  ;;  %v38_v13 = vld [vmem:[#allocation2 + $0x60] sm:$0xff]  ;;  %v35_v16 = vld [vmem:[#allocation2 + $0x48] sm:$0xff]  ;;  %v33_v18 = vld [vmem:[#allocation2 + $0x38] sm:$0xff] }
  0x13   :  { %226 = vmatprep.subr.mxu0 %v298_v0  ;;  %237 = vmatprep.subr.mxu1 %v298_v0  ;;  %v34_v17 = vld [vmem:[#allocation2 + $0x40] sm:$0xff]  ;;  %v32_v19 = vld [vmem:[#allocation2 + $0x30] sm:$0xff]  ;;  %v31_v20 = vld [vmem:[#allocation2 + $0x28] sm:$0xff] }
  0x14   :  { %227 = vmatpush3.msra.mxu0 %v27_v4  ;;  %238 = vmatpush3.msra.mxu1 %v43_v6  ;;  %v30_v21 = vld [vmem:[#allocation2 + $0x20] sm:$0xff]  ;;  %v47_v27 = vld [vmem:[#allocation2 + $0xa8] sm:$0xff] }
  0x15   :  { %228 = vmatprep.subr.mxu0 %v298_v0  ;;  %239 = vmatprep.subr.mxu1 %v298_v0  ;;  %v46_v22 = vld [vmem:[#allocation2 + $0xa0] sm:$0xff] }
  0x16   :  { %229 = vmatpush3.msra.mxu0 %v26_v7  ;;  %240 = vmatpush3.msra.mxu1 %v42_v9 }
  0x17   :  { %231 = vmatmul.mubr.msk.f32.vlgmr.msra.gmra.mxu0 %vm48_vm1, %v25_v8  ;;  %241 = vmatprep.subr.mxu1 %v298_v0 }
  0x18   :  { %242 = vmatpush3.msra.mxu1 %v41_v10 }
  0x19   :  { %243 = vmatprep.subr.mxu1 %v298_v0 }
  0x1a   :  { %244 = vmatpush3.msra.mxu1 %v40_v11 }
  0x1b   :  { %245 = vmatprep.subr.mxu1 %v298_v0 }
  0x1c   :  { %246 = vmatpush3.msra.mxu1 %v39_v12 }
  0x1d   :  { %247 = vmatprep.subr.mxu1 %v298_v0 }
  0x1e   :  { %248 = vmatpush3.msra.mxu1 %v38_v13 }
  0x1f   :  { %249 = vmatprep.subr.mxu1 %v298_v0 }
  0x20   :  { %250 = vmatpush3.msra.mxu1 %v37_v14 }
  0x21   :  { %251 = vmatprep.subr.mxu1 %v298_v0 }
  0x22   :  { %252 = vmatpush3.msra.mxu1 %v36_v15 }
  0x23   :  { %253 = vmatprep.subr.mxu1 %v298_v0 }
  0x24   :  { %254 = vmatpush3.msra.mxu1 %v35_v16 }
  0x25   :  { %255 = vmatprep.subr.mxu1 %v298_v0 }
  0x26   :  { %256 = vmatpush3.msra.mxu1 %v34_v17 }
  0x27   :  { %257 = vmatprep.subr.mxu1 %v298_v0 }
  0x28   :  { %258 = vmatpush3.msra.mxu1 %v33_v18 }
  0x29   :  { %259 = vmatprep.subr.mxu1 %v298_v0 }
  0x2a   :  { %260 = vmatpush3.msra.mxu1 %v32_v19 }
  0x2b   :  { %261 = vmatprep.subr.mxu1 %v298_v0 }
  0x2c   :  { %262 = vmatpush3.msra.mxu1 %v31_v20 }
  0x2d   :  { %263 = vmatprep.subr.mxu1 %v298_v0 }
  0x2e   :  { %264 = vmatpush3.msra.mxu1 %v30_v21 }
  0xd7   :  { %v118_v23 = vpop.f32.mrf.mxu0 }
  0xd8   :  { %v119_v24 = vadd.f32 %v118_v23, %v46_v22 }
  0xd9   :  { %v232_v25 = vpop.f32.mrf.mxu0 }
  0xda   :  { %v122_v26 = vmax.f32 %v119_v24, 0.0 }
  0xdc   :  { %266 = vmatmul.mubr.f32.vlgmr.msra.gmra.mxu1 %v122_v26 }
 0x19c   :  { %v189_v28 = vpop.f32.mrf.mxu1 }
 0x19d   :  { %v190_v29 = vadd.f32 %v189_v28, %v47_v27 }
 0x19e   :  { %v267_v30 = vpop.f32.mrf.mxu1 }
 0x19f   :  { %193 = vst [vmem:[%s348_s2] sm:$0xff] %v190_v29 }
 0x1a0   :  { %198 = vsyncpa [#allocation3], 1 }

</bundles_post_ra>
